<compile_context>
chip_gen: v7x
topology: tpu7x:2x2x1
jax: 0.10.0
libtpu: 0.0.40
codegen_flags: <defaults>
</compile_context>

<pallas_src>
import jax
import jax.numpy as jnp
from jax.experimental import pallas as pl
from jax.experimental.pallas import tpu as pltpu


def _make_gem_kernel(eps: float, inv_hw: float, static_int_p=None):
    """Build the GeM kernel body.

    If `static_int_p` is given (inference-time frozen integer exponent),
    x**p is computed with repeated VPU multiplies instead of per-element EUP
    log/exp — keeps the kernel memory-bound on v7x where the single EUP would
    otherwise cap throughput.  The final (1/p) power is applied only to the
    tiny (tb, tc) mean, so it is always cheap.
    """

    def kernel(p_ref, x_ref, o_ref):
        x = x_ref[...].astype(jnp.float32)           # (tb, tc, HW)
        xc = jnp.maximum(x, eps)                     # clamp(min=eps)  (> 0)

        if static_int_p is not None:
            xp = xc
            for _ in range(int(static_int_p) - 1):   # x**p on the VPU
                xp = xp * xc
            inv_p = 1.0 / float(static_int_p)
        else:
            p = p_ref[0]                             # learnable exponent (SMEM scalar)
            xp = jnp.exp(p * jnp.log(xc))            # x**p via EUP exp/log (x > 0)
            inv_p = 1.0 / p

        m = jnp.sum(xp, axis=-1) * inv_hw            # spatial mean -> (tb, tc)
        y = jnp.exp(jnp.log(m) * inv_p)              # m ** (1/p); m >= eps**p > 0
        o_ref[...] = y.astype(o_ref.dtype)

    return kernel


def _choose_tiles(B, C, HW, itemsize, budget_bytes=8 * 1024 * 1024):
    """Pick (tb, tc) so one (tb, tc, HW) block stays under ~budget_bytes
    (double-buffered it stays well inside the 32 MiB scoped VMEM we request,
    which is safe on v5e/v6e/v7x) while respecting the (8, 128) tiling rule:
    tc is either full C or a multiple of the sublane count, and HW is kept
    full-extent on the lane axis so loads/reduces are unmasked."""
    sublane = 8 if itemsize >= 4 else (16 if itemsize == 2 else 32)
    row_bytes = HW * itemsize
    max_rows = max(1, budget_bytes // row_bytes)     # (b*c) rows per block

    if C <= max_rows:
        tc = C                                       # full-C block (always legal)
    else:
        tc = None
        d = sublane
        while d <= max_rows:
            if C % d == 0:
                tc = d                               # largest fitting divisor
            d += sublane
        if tc is None:                               # C not tileable under budget
            tc = C if C % sublane != 0 else sublane
    tb = max(1, min(B, max_rows // max(tc, 1)))
    while B % tb != 0:                               # keep every block full
        tb -= 1
    return tb, tc


def gem_pool(x, p, eps, static_int_p=None):
    """x: (B, C, H, W); p: scalar exponent; eps: clamp floor. Returns (B, C)."""
    B, C, H, W = x.shape
    HW = H * W
    xr = x.reshape(B, C, HW)                         # keep input dtype (bf16 stays bf16)
    tb, tc = _choose_tiles(B, C, HW, xr.dtype.itemsize)
    grid = (pl.cdiv(B, tb), pl.cdiv(C, tc))
    p_arr = jnp.asarray(p, dtype=jnp.float32).reshape(1)

    # TODO(synk): for very large spatial maps (HW*min_block > VMEM budget) add a
    # third "arbitrary" grid axis over HW chunks with an f32 VMEM accumulator.
    kernel = _make_gem_kernel(float(eps), 1.0 / float(HW), static_int_p)

    out = pl.pallas_call(
        kernel,
        out_shape=jax.ShapeDtypeStruct((B, C), x.dtype),
        grid=grid,
        in_specs=[
            pl.BlockSpec(memory_space=pltpu.MemorySpace.SMEM),       # p (scalar param)
            pl.BlockSpec((tb, tc, HW), lambda i, j: (i, j, 0)),      # x tile
        ],
        out_specs=pl.BlockSpec((tb, tc), lambda i, j: (i, j)),
        compiler_params=pltpu.CompilerParams(
            dimension_semantics=("parallel", "parallel"),
            vmem_limit_bytes=32 * 1024 * 1024,
        ),
    )(p_arr, xr)
    return out


def gem_reference(x, p, eps):
    # Pure-JAX reference matching the PyTorch forward exactly.
    xc = jnp.maximum(x, eps)
    return jnp.power(jnp.mean(jnp.power(xc, p), axis=(2, 3)), 1.0 / p)


if __name__ == "__main__":
    # Deterministic parameter init per module __init__: p = ones(1) * config['p']
    pooling_config = {"p": 3.0, "eps": 1e-6}
    p_param = jnp.ones((1,), jnp.float32) * pooling_config["p"]
    eps = pooling_config["eps"]

    key = jax.random.PRNGKey(0)
    B, C, H, W = 2, 4, 16, 16
    x = jax.random.normal(key, (B, C, H, W), dtype=jnp.float32)

    y_ref = gem_reference(x, p_param[0], eps)

    # General path: runtime (learnable) exponent p.
    y = jax.block_until_ready(gem_pool(x, p_param[0], eps))
    assert y.shape == (B, C), y.shape
    assert jnp.allclose(y, y_ref, rtol=1e-4, atol=1e-5), (y, y_ref)

    # Specialized path: frozen integer p (inference) -> no per-element EUP work.
    y_s = jax.block_until_ready(gem_pool(x, p_param[0], eps, static_int_p=3))
    assert jnp.allclose(y_s, y_ref, rtol=1e-4, atol=1e-5), (y_s, y_ref)

    print("KERNEL_OK")
</pallas_src>

<mosaic_0001>
module attributes {stable_mosaic.version = 11 : i64} {
  func.func @kernel(%arg0: i32, %arg1: i32, %arg2: memref<1xf32, #tpu.memory_space<smem>>, %arg3: memref<2x4x256xf32, #tpu.memory_space<vmem>>, %arg4: memref<2x4xf32, #tpu.memory_space<vmem>>) attributes {dimension_semantics = [#tpu.dimension_semantics<parallel>, #tpu.dimension_semantics<parallel>], iteration_bounds = array<i64: 1, 1>, scalar_prefetch = 0 : i64, scratch_operands = 0 : i64, tpu.core_type = #tpu.core_type<tc>, window_params = [{transform_indices = @transform_0, window_bounds = array<i64: 1>}, {transform_indices = @transform_1, window_bounds = array<i64: 2, 4, 256>}, {transform_indices = @transform_2, window_bounds = array<i64: 2, 4>}]} {
    %c0 = arith.constant 0 : index
    %c0_0 = arith.constant 0 : index
    %c0_1 = arith.constant 0 : index
    %0 = vector.load %arg3[%c0, %c0_0, %c0_1] : memref<2x4x256xf32, #tpu.memory_space<vmem>>, vector<2x4x256xf32>
    %cst = arith.constant 9.99999997E-7 : f32
    %1 = vector.broadcast %cst : f32 to vector<2x4x256xf32>
    %2 = arith.maximumf %0, %1 : vector<2x4x256xf32>
    %c0_2 = arith.constant 0 : index
    %3 = memref.load %arg2[%c0_2] : memref<1xf32, #tpu.memory_space<smem>>
    %4 = math.log %2 : vector<2x4x256xf32>
    %5 = vector.broadcast %3 : f32 to vector<2x4x256xf32>
    %6 = arith.mulf %5, %4 : vector<2x4x256xf32>
    %7 = math.exp %6 : vector<2x4x256xf32>
    %cst_3 = arith.constant 1.000000e+00 : f32
    %8 = arith.divf %cst_3, %3 : f32
    %cst_4 = arith.constant dense<0.000000e+00> : vector<2x4xf32>
    %9 = vector.multi_reduction <add>, %7, %cst_4 [2] : vector<2x4x256xf32> to vector<2x4xf32>
    %cst_5 = arith.constant 3.906250e-03 : f32
    %10 = vector.broadcast %cst_5 : f32 to vector<2x4xf32>
    %11 = arith.mulf %9, %10 : vector<2x4xf32>
    %12 = math.log %11 : vector<2x4xf32>
    %13 = vector.broadcast %8 : f32 to vector<2x4xf32>
    %14 = arith.mulf %12, %13 : vector<2x4xf32>
    %15 = math.exp %14 : vector<2x4xf32>
    %c0_6 = arith.constant 0 : index
    %c0_7 = arith.constant 0 : index
    %16 = vector.load %arg4[%c0_6, %c0_7] : memref<2x4xf32, #tpu.memory_space<vmem>>, vector<2x4xf32>
    tpu.vector_store %arg4[%c0_6, %c0_7], %15 {strides = array<i32>} : memref<2x4xf32, #tpu.memory_space<vmem>>, vector<2x4xf32>,
    return
  }
  func.func @transform_0(%arg0: i32, %arg1: i32) -> i32 {
    %c0_i32 = arith.constant 0 : i32
    %c0_i32_0 = arith.constant 0 : i32
    return %c0_i32 : i32
  }
  func.func @transform_1(%arg0: i32, %arg1: i32) -> (i32, i32, i32) {
    %c0_i32 = arith.constant 0 : i32
    %c0_i32_0 = arith.constant 0 : i32
    return %arg0, %arg1, %c0_i32 : i32, i32, i32
  }
  func.func @transform_2(%arg0: i32, %arg1: i32) -> (i32, i32) {
    %c0_i32 = arith.constant 0 : i32
    return %arg0, %arg1 : i32, i32
  }
}

</mosaic_0001>

<bundles_post_ra>
// kernel: tpu_custom_call.1
= control target key start
LH: loop header
LB: loop body
LE: loop exit
PB: predicated region body
PF: predicated region fallthrough
CT: control target
= control target key end

     0   :  { %8 = vsyncpa [#allocation4], 0  ;;  %s226_s0 = inlined_call_operand.<no memory space> [shape: f32[1], index: 0, kind: input, shape index: {}]   ;;  %s227_s1 = inlined_call_operand.hbm [shape: f32[2,4,256], index: 1, kind: input, shape index: {}]   ;;  %s228_s2 = inlined_call_operand.hbm [shape: f32[2,4], index: 2, kind: output, shape index: {}]  }
   0x1   :  { %9 = vsyncpa [#allocation5], 0  ;;  %s180_s9 = smov [#allocation3]   ;;  %s132_s13 = scalar_lea.hbm %s227_s1, 256 }
   0x2   :  { %s17_s10 = sshll.u32 %s180_s9, 4  ;;  %p133_p0 = scmp.ne.s32.totalorder %s227_s1, %s132_s13  ;;  %s18_s10 = int_to_ptr.vmem [resolvable:$true] %s17_s10 }
   0x3   :  { %p136_p1 = scmp.lt.u32.totalorder %s132_s13, %s227_s1 }
   0x5   :  { %p138_p2 = pnand %p136_p1, %p133_p0 }
   0x7   :  { %141 = shalt.err (!%p138_p2)
}
   0x8   :  { %s142_s18 = scalar_lea.vmem %s18_s10, 256  ;;  %p147_p4 = scmp.lt.s32.totalorder %s18_s10, %s18_s10 }
   0x9   :  { %p143_p3 = scmp.ne.s32.totalorder %s18_s10, %s142_s18  ;;  %p148_p5 = scmp.lt.s32.totalorder %s142_s18, %s142_s18 }
   0xb   :  { %p149_p6 = por %p148_p5, %p147_p4 }
   0xd   :  { %p150_p7 = pnand %p149_p6, %p143_p3 }
   0xf   :  { %153 = shalt.err (!%p150_p7)
}
  0x10   :  { %s181_s19 = smov 128   ;;  %s182_s20 = smov 8  }
  0x11   :  { %23 = dma.hbm_to_vmem [thread:$0]  %s227_s1, 256, %s18_s10, [#allocation4], %s181_s19, %s181_s19, %s182_s20  }
  0x12   :  { %176 = dma.done.wait [#allocation4], 256  }
  0x13   :  { %177 = vsyncadd [#allocation4], 4294967040  ;;  %v36_v0 = vstv %s226_s0  ;;  %v27_v1 = vld [vmem:[#allocation3] sm:$0xff]  ;;  %v28_v2 = vld [vmem:[#allocation3 + $0x8] sm:$0xff]  ;;  %vm52_vm0 = vcmask 1043456   ;;  %v78_v37 = vlaneseq  ;;  %s183_s1 = smov [#allocation6]  }
  0x14   :  { %114 = vrcp.f32 %v36_v0  ;;  %v29_v3 = vmax.f32 %v27_v1, 1e-06  ;;  %v30_v4 = vmax.f32 %v28_v2, 1e-06  ;;  %s99_s25 = sshll.u32 %s183_s1, 4  ;;  %vm88_vm1 = vcmask 1041409   ;;  %s100_s25 = int_to_ptr.vmem [resolvable:$true] %s99_s25 }
  0x15   :  { %v79_v38 = vand.u32 127, %v78_v37  ;;  %v81_v39 = vshrl.u32 %v78_v37, 7  ;;  %vm91_vm2 = vcmask 25600   ;;  %s154_s26 = scalar_lea.vmem %s100_s25, 32  ;;  %p159_p9 = scmp.lt.s32.totalorder %s100_s25, %s100_s25 }
  0x16   :  { %116 = vlog2.f32 %v29_v3  ;;  %p155_p8 = scmp.ne.s32.totalorder %s100_s25, %s154_s26  ;;  %p160_p10 = scmp.lt.s32.totalorder %s154_s26, %s154_s26 }
  0x17   :  { %118 = vlog2.f32 %v30_v4  ;;  %v82_v40 = vsub.s32 %v79_v38, %v81_v39 }
  0x18   :  { %p161_p11 = por %p160_p10, %p159_p9 }
  0x1a   :  { %p162_p12 = pnand %p161_p11, %p155_p8 }
  0x1e   :  { %v115_v5 = vpop.eup %114 }
  0x1f   :  { %108 = vpush %v115_v5 }
  0x20   :  { %v117_v6 = vpop.eup %116 }
  0x21   :  { %v119_v7 = vpop.eup %118  ;;  %v33_v8 = vmul.f32 0.6931472, %v117_v6 }
  0x22   :  { %v35_v9 = vmul.f32 0.6931472, %v119_v7 }
  0x23   :  { %v37_v10 = vmul.f32 %v36_v0, %v33_v8 }
  0x24   :  { %v38_v11 = vmul.f32 %v36_v0, %v35_v9 }
  0x25   :  { %v39_v12 = vmul.f32 1.442695, %v37_v10 }
  0x26   :  { %v41_v13 = vmul.f32 1.442695, %v38_v11 }
  0x27   :  { %120 = vpow2.f32 %v39_v12 }
  0x28   :  { %122 = vpow2.f32 %v41_v13 }
  0x31   :  { %v121_v14 = vpop.eup %120 }
  0x32   :  { %v123_v15 = vpop.eup %122  ;;  %v48_v16 = vcombine.high %v121_v14, %v121_v14  ;;  %v53_v17 = vsel %vm52_vm0, %v121_v14, 0.0 }
  0x33   :  { %v49_v18 = vcombine.high %v123_v15, %v123_v15  ;;  %v58_v20 = vsel %vm52_vm0, %v123_v15, 0.0 }
  0x34   :  { %v54_v19 = vsel %vm52_vm0, %v48_v16, 0.0 }
  0x35   :  { %v55_v21 = vadd.f32 %v54_v19, %v53_v17  ;;  %v59_v22 = vsel %vm52_vm0, %v49_v18, 0.0 }
  0x36   :  { %v60_v23 = vadd.f32 %v59_v22, %v58_v20 }
  0x37   :  { %56 = vadd.xlane.f32.xlu0 %v55_v21 }
  0x3b   :  { %61 = vadd.xlane.f32.xlu0 %v60_v23 }
  0x50   :  { %s109_s0 = spop %108 }
  0x51   :  { %v69_v29 = vstv %s109_s0 }
  0xc4   :  { %v57_v24 = vpop.xlane.xlu0 %56 }
  0xc5   :  { %v63_v25 = vmul.f32 0.00390625, %v57_v24 }
  0xc7   :  { %124 = vlog2.f32 %v63_v25 }
  0xc8   :  { %v62_v26 = vpop.xlane.xlu0 %61 }
  0xc9   :  { %v64_v27 = vmul.f32 0.00390625, %v62_v26 }
  0xcb   :  { %126 = vlog2.f32 %v64_v27 }
  0xd1   :  { %v125_v28 = vpop.eup %124 }
  0xd2   :  { %v66_v30 = vmul.f32 0.6931472, %v125_v28 }
  0xd4   :  { %v70_v31 = vmul.f32 %v69_v29, %v66_v30 }
  0xd5   :  { %v127_v32 = vpop.eup %126 }
  0xd6   :  { %v68_v33 = vmul.f32 0.6931472, %v127_v32  ;;  %v72_v34 = vmul.f32 1.442695, %v70_v31 }
  0xd8   :  { %v71_v35 = vmul.f32 %v69_v29, %v68_v33  ;;  %128 = vpow2.f32 %v72_v34 }
  0xda   :  { %v74_v36 = vmul.f32 1.442695, %v71_v35 }
  0xdc   :  { %130 = vpow2.f32 %v74_v36 }
  0xe2   :  { %v129_v41 = vpop.eup %128 }
  0xe3   :  { %v83_v43 = vrot.slane %v129_v41, %v82_v40 }
  0xe6   :  { %v131_v42 = vpop.eup %130 }
  0xe7   :  { %v87_v44 = vrot.slane %v131_v42, %v82_v40 }
  0xe9   :  { %v89_v45 = vsel %vm88_vm1, %v87_v44, %v83_v43 }
  0xea   :  { %92 = vst.msk [vmem:[#allocation6] sm:$0x3] %vm91_vm2, %v89_v45 }
  0xeb   :  { %165 = shalt.err (!%p162_p12)
}
  0xec   :  { %s166_s29 = scalar_lea.hbm %s228_s2, 32 }
  0xed   :  { %p167_p13 = scmp.ne.s32.totalorder %s228_s2, %s166_s29  ;;  %p170_p0 = scmp.lt.u32.totalorder %s166_s29, %s228_s2 }
  0xef   :  { %p172_p1 = pnand %p170_p0, %p167_p13 }
  0xf1   :  { %175 = shalt.err (!%p172_p1)
}
  0xf2   :  { %102 = dma.vmem_to_hbm [thread:$0]  %s100_s25, 32, %s228_s2, [#allocation5]  }
  0xf3   :  { %178 = dma.done.wait [#allocation5], 32  }
  0xf4   :  { %179 = vsyncadd [#allocation5], 4294967264 }
  0xf5   :  { %106 = vsyncpa [#allocation4], 1 }
  0xf6   :  { %107 = vsyncpa [#allocation5], 1 }

</bundles_post_ra>
